<compile_context>
chip_gen: v7x
topology: tpu7x:2x2x1
jax: 0.10.0
libtpu: 0.0.40
codegen_flags: <defaults>
</compile_context>

<pallas_src>
import functools
import math

import jax
import jax.numpy as jnp
from jax.experimental import pallas as pl
from jax.experimental.pallas import tpu as pltpu


# ----------------------------------------------------------------------------
# Generic tiled linear (used for the patch-embed projection)
# ----------------------------------------------------------------------------
def _matmul_kernel(x_ref, w_ref, b_ref, o_ref, acc_ref, *, activation):
    @pl.when(pl.program_id(2) == 0)
    def _init():
        acc_ref[...] = jnp.zeros_like(acc_ref)

    acc_ref[...] += jnp.dot(x_ref[...], w_ref[...],
                            preferred_element_type=jnp.float32)

    @pl.when(pl.program_id(2) == pl.num_programs(2) - 1)
    def _finalize():
        y = acc_ref[...] + b_ref[...]
        if activation == "gelu":
            y = 0.5 * y * (1.0 + jax.lax.erf(y * (1.0 / math.sqrt(2.0))))
        o_ref[...] = y.astype(o_ref.dtype)


def _pick_tile(dim, cap, align):
    """Largest tile <= cap that divides dim and is `align`-aligned (or full)."""
    if dim <= cap:
        return dim
    t = (cap // align) * align
    while t >= align:
        if dim % t == 0:
            return t
        t -= align
    return dim


def linear(x, w, b, activation="none"):
    """x: (M, K), w: (K, N), b: (N,) -> (M, N), tiled + pipelined matmul."""
    M, K = x.shape
    _, N = w.shape
    # Tile caps chosen so (2x double-buffered inputs + acc) stay well inside
    # v7x's 64 MiB VMEM; 128-aligned N/K tiles keep the MXU full on all gens.
    tm = _pick_tile(M, 256, 8)
    tn = _pick_tile(N, 512, 128)
    tk = _pick_tile(K, 512, 128)
    grid = (M // tm, N // tn, K // tk)
    return pl.pallas_call(
        functools.partial(_matmul_kernel, activation=activation),
        out_shape=jax.ShapeDtypeStruct((M, N), x.dtype),
        grid=grid,
        in_specs=[
            pl.BlockSpec((tm, tk), lambda i, j, k: (i, k)),
            pl.BlockSpec((tk, tn), lambda i, j, k: (k, j)),
            pl.BlockSpec((1, tn), lambda i, j, k: (0, j)),
        ],
        out_specs=pl.BlockSpec((tm, tn), lambda i, j, k: (i, j)),
        scratch_shapes=[pltpu.VMEM((tm, tn), jnp.float32)],
        compiler_params=pltpu.CompilerParams(
            dimension_semantics=("parallel", "parallel", "arbitrary")),
    )(x, w, b.reshape(1, N))


# ----------------------------------------------------------------------------
# Standalone LayerNorm (only used for the final norm on the cls tokens)
# ----------------------------------------------------------------------------
def _layernorm_kernel(x_ref, g_ref, b_ref, o_ref, *, eps):
    x = x_ref[...].astype(jnp.float32)
    mu = jnp.mean(x, axis=-1, keepdims=True)
    var = jnp.mean((x - mu) * (x - mu), axis=-1, keepdims=True)
    y = (x - mu) * jax.lax.rsqrt(var + eps)
    o_ref[...] = (y * g_ref[...] + b_ref[...]).astype(o_ref.dtype)


def layernorm(x, gamma, beta, eps=1e-5):
    M, D = x.shape
    return pl.pallas_call(
        functools.partial(_layernorm_kernel, eps=eps),
        out_shape=jax.ShapeDtypeStruct((M, D), x.dtype),
        grid=(1,),
        in_specs=[
            pl.BlockSpec((M, D), lambda i: (0, 0)),
            pl.BlockSpec((1, D), lambda i: (0, 0)),
            pl.BlockSpec((1, D), lambda i: (0, 0)),
        ],
        out_specs=pl.BlockSpec((M, D), lambda i: (0, 0)),
    )(x, gamma.reshape(1, D), beta.reshape(1, D))


# ----------------------------------------------------------------------------
# Fused transformer-block kernels
# ----------------------------------------------------------------------------
def _attn_block_kernel(x_ref, g_ref, b_ref, wqkv_ref, bqkv_ref, wo_ref, bo_ref,
                       o_ref, *, num_heads, eps):
    """Per batch element: x + OutProj(MHA(LN1(x))).  Output is lane-dense (S,E)."""
    x = x_ref[0].astype(jnp.float32)             # (S, E)
    S, E = x.shape
    dh = E // num_heads
    scale = 1.0 / math.sqrt(dh)

    # --- LayerNorm 1 (fused prologue; rows already resident in VMEM) ---
    mu = jnp.mean(x, axis=-1, keepdims=True)
    var = jnp.mean((x - mu) * (x - mu), axis=-1, keepdims=True)
    xn = (x - mu) * jax.lax.rsqrt(var + eps) * g_ref[...] + b_ref[...]

    # --- QKV projection (single MXU pass, columns ordered [Q | K | V]) ---
    qkv = jnp.dot(xn, wqkv_ref[...],
                  preferred_element_type=jnp.float32) + bqkv_ref[...]   # (S, 3E)

    # --- per-head attention; head merge folded into the out-projection ---
    wo = wo_ref[...]                              # (E, E)
    acc = jnp.zeros((S, E), jnp.float32)
    for h in range(num_heads):
        off = h * dh
        q = qkv[:, off:off + dh] * scale          # scale folded into Q
        k = qkv[:, E + off:E + off + dh]
        v = qkv[:, 2 * E + off:2 * E + off + dh]
        s = jax.lax.dot_general(q, k, (((1,), (1,)), ((), ())),
                                preferred_element_type=jnp.float32)     # (S, S)
        s = s - jnp.max(s, axis=-1, keepdims=True)
        p = jnp.exp(s)
        p = p * pl.reciprocal(jnp.sum(p, axis=-1, keepdims=True), approx=True)
        oh = jnp.dot(p, v, preferred_element_type=jnp.float32)          # (S, dh)
        acc = acc + jnp.dot(oh, wo[off:off + dh, :],
                            preferred_element_type=jnp.float32)         # (S, E)

    # --- out-proj bias + residual add (fused; no extra HBM pass) ---
    o_ref[0] = (x + acc + bo_ref[...]).astype(o_ref.dtype)


def _mlp_block_kernel(x_ref, g_ref, b_ref, w1_ref, b1_ref, w2_ref, b2_ref,
                      o_ref, *, eps):
    """Per batch element: x + FC2(GELU(FC1(LN2(x))))."""
    x = x_ref[0].astype(jnp.float32)              # (S, E)
    mu = jnp.mean(x, axis=-1, keepdims=True)
    var = jnp.mean((x - mu) * (x - mu), axis=-1, keepdims=True)
    xn = (x - mu) * jax.lax.rsqrt(var + eps) * g_ref[...] + b_ref[...]

    h = jnp.dot(xn, w1_ref[...], preferred_element_type=jnp.float32) + b1_ref[...]
    h = 0.5 * h * (1.0 + jax.lax.erf(h * (1.0 / math.sqrt(2.0))))       # exact GELU
    y = jnp.dot(h, w2_ref[...], preferred_element_type=jnp.float32) + b2_ref[...]

    o_ref[0] = (x + y).astype(o_ref.dtype)


def attn_block(x, p, num_heads, eps=1e-5):
    B, S, E = x.shape
    full2 = lambda shape: pl.BlockSpec(shape, lambda b: (0, 0))
    return pl.pallas_call(
        functools.partial(_attn_block_kernel, num_heads=num_heads, eps=eps),
        out_shape=jax.ShapeDtypeStruct((B, S, E), x.dtype),
        grid=(B,),
        in_specs=[
            pl.BlockSpec((1, S, E), lambda b: (b, 0, 0)),   # x
            full2((1, E)),                                  # ln1 gamma
            full2((1, E)),                                  # ln1 beta
            full2((E, 3 * E)),                              # in_proj weight
            full2((1, 3 * E)),                              # in_proj bias
            full2((E, E)),                                  # out_proj weight
            full2((1, E)),                                  # out_proj bias
        ],
        out_specs=pl.BlockSpec((1, S, E), lambda b: (b, 0, 0)),
        compiler_params=pltpu.CompilerParams(dimension_semantics=("parallel",)),
    )(x, p["ln1_g"].reshape(1, E), p["ln1_b"].reshape(1, E),
      p["in_w"], p["in_b"].reshape(1, 3 * E),
      p["out_w"], p["out_b"].reshape(1, E))


def mlp_block(x, p, eps=1e-5):
    B, S, E = x.shape
    Hd = p["fc1_w"].shape[1]
    full2 = lambda shape: pl.BlockSpec(shape, lambda b: (0, 0))
    return pl.pallas_call(
        functools.partial(_mlp_block_kernel, eps=eps),
        out_shape=jax.ShapeDtypeStruct((B, S, E), x.dtype),
        grid=(B,),
        in_specs=[
            pl.BlockSpec((1, S, E), lambda b: (b, 0, 0)),   # x
            full2((1, E)),                                  # ln2 gamma
            full2((1, E)),                                  # ln2 beta
            full2((E, Hd)),                                 # fc1 weight
            full2((1, Hd)),                                 # fc1 bias
            full2((Hd, E)),                                 # fc2 weight
            full2((1, E)),                                  # fc2 bias
        ],
        out_specs=pl.BlockSpec((1, S, E), lambda b: (b, 0, 0)),
        compiler_params=pltpu.CompilerParams(dimension_semantics=("parallel",)),
    )(x, p["ln2_g"].reshape(1, E), p["ln2_b"].reshape(1, E),
      p["fc1_w"], p["fc1_b"].reshape(1, Hd),
      p["fc2_w"], p["fc2_b"].reshape(1, E))


# ----------------------------------------------------------------------------
# Model (parameter setup + forward wiring is plain-JAX glue)
# ----------------------------------------------------------------------------
def init_params(key, *, img_size, patch_size, in_chans, embed_dim, depth,
                num_heads, mlp_ratio):
    grid = img_size // patch_size
    num_patches = grid * grid
    mlp_hidden = int(embed_dim * mlp_ratio)
    std = 0.02

    def nrm(k, shape):
        return jax.random.normal(k, shape, dtype=jnp.float32) * std

    keys = jax.random.split(key, 4 + depth)
    params = {
        # Conv2d patch projection flattened to (C*P*P, E): a patch vector
        # ordered (c, kh, kw) @ W reproduces the strided conv exactly.
        "proj_w": nrm(keys[0], (in_chans * patch_size * patch_size, embed_dim)),
        "proj_b": jnp.zeros((embed_dim,), jnp.float32),
        "cls": nrm(keys[1], (1, 1, embed_dim)),
        "pos": nrm(keys[2], (1, num_patches + 1, embed_dim)),
        "norm_g": jnp.ones((embed_dim,), jnp.float32),
        "norm_b": jnp.zeros((embed_dim,), jnp.float32),
        "blocks": [],
    }
    for d in range(depth):
        bk = jax.random.split(keys[4 + d], 4)
        params["blocks"].append({
            "ln1_g": jnp.ones((embed_dim,), jnp.float32),
            "ln1_b": jnp.zeros((embed_dim,), jnp.float32),
            # in_proj: (E, 3E), columns ordered [Q | K | V]
            "in_w": nrm(bk[0], (embed_dim, 3 * embed_dim)),
            "in_b": jnp.zeros((3 * embed_dim,), jnp.float32),
            "out_w": nrm(bk[1], (embed_dim, embed_dim)),
            "out_b": jnp.zeros((embed_dim,), jnp.float32),
            "ln2_g": jnp.ones((embed_dim,), jnp.float32),
            "ln2_b": jnp.zeros((embed_dim,), jnp.float32),
            "fc1_w": nrm(bk[2], (embed_dim, mlp_hidden)),
            "fc1_b": jnp.zeros((mlp_hidden,), jnp.float32),
            "fc2_w": nrm(bk[3], (mlp_hidden, embed_dim)),
            "fc2_b": jnp.zeros((embed_dim,), jnp.float32),
        })
    return params


def ast_forward(x, params, *, patch_size, num_heads):
    B, C, H, W = x.shape
    P = patch_size
    gh, gw = H // P, W // P
    E = params["proj_w"].shape[1]

    # Patch extraction (glue): (B,C,H,W) -> (B*np, C*P*P), patch vec = (c,kh,kw)
    patches = x.reshape(B, C, gh, P, gw, P)
    patches = patches.transpose(0, 2, 4, 1, 3, 5).reshape(B * gh * gw, C * P * P)

    tok = linear(patches, params["proj_w"], params["proj_b"])    # patch embed
    tok = tok.reshape(B, gh * gw, E)

    cls = jnp.broadcast_to(params["cls"], (B, 1, E))
    xseq = jnp.concatenate([cls, tok], axis=1)                   # (B, S, E)
    xseq = xseq + params["pos"]                                  # n_patches == N

    # Two fused pallas_calls per transformer block.
    for blk in params["blocks"]:
        xseq = attn_block(xseq, blk, num_heads)
        xseq = mlp_block(xseq, blk)

    # Only the cls row is returned, and LayerNorm is row-wise, so only
    # normalize the cls tokens (identical to norm(x)[:, 0]).
    cls_tok = xseq[:, 0]                                         # (B, E)
    return layernorm(cls_tok, params["norm_g"], params["norm_b"])


# ----------------------------------------------------------------------------
if __name__ == "__main__":
    # Small, consistent configuration: 16x16 input, 8x8 patches -> 4 patches,
    # seq len 5 (with cls token), embed_dim 32, 2 blocks, 4 heads, batch 2.
    IMG, PATCH, C, E, DEPTH, HEADS, MLP_RATIO = 16, 8, 1, 32, 2, 4, 4.0
    B = 2

    key = jax.random.PRNGKey(0)
    kp, kx = jax.random.split(key)
    params = init_params(kp, img_size=IMG, patch_size=PATCH, in_chans=C,
                         embed_dim=E, depth=DEPTH, num_heads=HEADS,
                         mlp_ratio=MLP_RATIO)
    x = jax.random.normal(kx, (B, C, IMG, IMG), dtype=jnp.float32)

    out = ast_forward(x, params, patch_size=PATCH, num_heads=HEADS)
    out = jax.block_until_ready(out)
    assert out.shape == (B, E) and out.dtype == jnp.float32
    assert bool(jnp.all(jnp.isfinite(out)))
    print("KERNEL_OK")
</pallas_src>

<mosaic_0001>
module attributes {stable_mosaic.version = 11 : i64} {
  func.func @_matmul_kernel(%arg0: i32, %arg1: i32, %arg2: i32, %arg3: memref<8x64xf32, #tpu.memory_space<vmem>>, %arg4: memref<64x32xf32, #tpu.memory_space<vmem>>, %arg5: memref<1x32xf32, #tpu.memory_space<vmem>>, %arg6: memref<8x32xf32, #tpu.memory_space<vmem>>, %arg7: memref<8x32xf32, #tpu.memory_space<vmem>>) attributes {dimension_semantics = [#tpu.dimension_semantics<parallel>, #tpu.dimension_semantics<parallel>, #tpu.dimension_semantics<arbitrary>], iteration_bounds = array<i64: 1, 1, 1>, scalar_prefetch = 0 : i64, scratch_operands = 1 : i64, tpu.core_type = #tpu.core_type<tc>, window_params = [{transform_indices = @transform_0, window_bounds = array<i64: 8, 64>}, {transform_indices = @transform_1, window_bounds = array<i64: 64, 32>}, {transform_indices = @transform_2, window_bounds = array<i64: 1, 32>}, {transform_indices = @transform_3, window_bounds = array<i64: 8, 32>}]} {
    %c0_i32 = arith.constant 0 : i32
    %0 = arith.cmpi eq, %arg2, %c0_i32 : i32
    %1 = arith.extui %0 : i1 to i32
    %c0_i32_0 = arith.constant 0 : i32
    %2 = arith.cmpi ne, %1, %c0_i32_0 : i32
    scf.if %2 {
      %cst_10 = arith.constant 0.000000e+00 : f32
      %12 = vector.broadcast %cst_10 : f32 to vector<8x32xf32>
      %c0_11 = arith.constant 0 : index
      %c0_12 = arith.constant 0 : index
      %13 = vector.load %arg7[%c0_11, %c0_12] : memref<8x32xf32, #tpu.memory_space<vmem>>, vector<8x32xf32>
      tpu.vector_store %arg7[%c0_11, %c0_12], %12 {strides = array<i32>} : memref<8x32xf32, #tpu.memory_space<vmem>>, vector<8x32xf32>,
    } else {
    }
    %c0 = arith.constant 0 : index
    %c0_1 = arith.constant 0 : index
    %3 = vector.load %arg7[%c0, %c0_1] : memref<8x32xf32, #tpu.memory_space<vmem>>, vector<8x32xf32>
    %c0_2 = arith.constant 0 : index
    %c0_3 = arith.constant 0 : index
    %4 = vector.load %arg3[%c0_2, %c0_3] : memref<8x64xf32, #tpu.memory_space<vmem>>, vector<8x64xf32>
    %c0_4 = arith.constant 0 : index
    %c0_5 = arith.constant 0 : index
    %5 = vector.load %arg4[%c0_4, %c0_5] : memref<64x32xf32, #tpu.memory_space<vmem>>, vector<64x32xf32>
    %cst = arith.constant dense<0.000000e+00> : vector<8x32xf32>
    %6 = tpu.matmul %4, %5, %cst {dimension_numbers = #tpu.dot_dimension_numbers<[1], [0], [0], [1], [0, 0, 1, 1], [], []>} : vector<8x64xf32>, vector<64x32xf32>, vector<8x32xf32> -> vector<8x32xf32>
    %7 = arith.addf %3, %6 : vector<8x32xf32>
    %c0_6 = arith.constant 0 : index
    %c0_7 = arith.constant 0 : index
    %8 = vector.load %arg7[%c0_6, %c0_7] : memref<8x32xf32, #tpu.memory_space<vmem>>, vector<8x32xf32>
    tpu.vector_store %arg7[%c0_6, %c0_7], %7 {strides = array<i32>} : memref<8x32xf32, #tpu.memory_space<vmem>>, vector<8x32xf32>,
    %c0_i32_8 = arith.constant 0 : i32
    %9 = arith.cmpi eq, %arg2, %c0_i32_8 : i32
    %10 = arith.extui %9 : i1 to i32
    %c0_i32_9 = arith.constant 0 : i32
    %11 = arith.cmpi ne, %10, %c0_i32_9 : i32
    scf.if %11 {
      %c0_10 = arith.constant 0 : index
      %c0_11 = arith.constant 0 : index
      %12 = vector.load %arg7[%c0_10, %c0_11] : memref<8x32xf32, #tpu.memory_space<vmem>>, vector<8x32xf32>
      %c0_12 = arith.constant 0 : index
      %c0_13 = arith.constant 0 : index
      %13 = vector.load %arg5[%c0_12, %c0_13] : memref<1x32xf32, #tpu.memory_space<vmem>>, vector<1x32xf32>
      %14 = vector.broadcast %13 : vector<1x32xf32> to vector<8x32xf32>
      %15 = arith.addf %12, %14 : vector<8x32xf32>
      %c0_14 = arith.constant 0 : index
      %c0_15 = arith.constant 0 : index
      %16 = vector.load %arg6[%c0_14, %c0_15] : memref<8x32xf32, #tpu.memory_space<vmem>>, vector<8x32xf32>
      tpu.vector_store %arg6[%c0_14, %c0_15], %15 {strides = array<i32>} : memref<8x32xf32, #tpu.memory_space<vmem>>, vector<8x32xf32>,
    } else {
    }
    return
  }
  func.func @transform_0(%arg0: i32, %arg1: i32, %arg2: i32) -> (i32, i32) {
    %c0_i32 = arith.constant 0 : i32
    return %arg0, %arg2 : i32, i32
  }
  func.func @transform_1(%arg0: i32, %arg1: i32, %arg2: i32) -> (i32, i32) {
    %c0_i32 = arith.constant 0 : i32
    return %arg2, %arg1 : i32, i32
  }
  func.func @transform_2(%arg0: i32, %arg1: i32, %arg2: i32) -> (i32, i32) {
    %c0_i32 = arith.constant 0 : i32
    %c0_i32_0 = arith.constant 0 : i32
    return %c0_i32, %arg1 : i32, i32
  }
  func.func @transform_3(%arg0: i32, %arg1: i32, %arg2: i32) -> (i32, i32) {
    %c0_i32 = arith.constant 0 : i32
    return %arg0, %arg1 : i32, i32
  }
}

</mosaic_0001>

<bundles_post_ra>
// kernel: tpu_custom_call.1
= control target key start
LH: loop header
LB: loop body
LE: loop exit
PB: predicated region body
PF: predicated region fallthrough
CT: control target
= control target key end

     0   :  { %vm19_vm0 = vcmask 261120   ;;  %v205_v3 = vmov 0.0|0.0   ;;  %v206_v6 = vmov 0.0   ;;  %vm207_vm1 = vmmov 0   ;;  %s274_s0 = inlined_call_operand.vmem [shape: f32[8,64], index: 0, kind: input, shape index: {}]   ;;  %s275_s1 = inlined_call_operand.vmem [shape: f32[64,32], index: 1, kind: input, shape index: {}]   ;;  %s276_s2 = inlined_call_operand.vmem [shape: f32[1,32], index: 2, kind: input, shape index: {}]   ;;  %s277_s3 = inlined_call_operand.hbm [shape: f32[8,32], index: 3, kind: output, shape index: {}]  }
   0x1   :  { %v23_v0 = vld [vmem:[%s275_s1] sm:$0xff]  ;;  %v24_v1 = vld [vmem:[%s275_s1 + $0x8] sm:$0xff]  ;;  %v25_v2 = vld [vmem:[%s275_s1 + $0x10] sm:$0xff]  ;;  %165 = vmatprep.subr.bf16.mxu0 %v205_v3  ;;  %20 = vst.msk [vmem:[#allocation2] sm:$0xff] %vm19_vm0, %v206_v6  ;;  %162 = vmatprep.mubr.msk.f32.mxu0 %vm207_vm1, %v206_v6 }
   0x2   :  { %v166_v4 = vpack.c.bf16 %v24_v1, %v23_v0  ;;  %v26_v5 = vld [vmem:[%s275_s1 + $0x18] sm:$0xff] }
   0x3   :  { %v169_v7 = vpack.c.bf16 %v26_v5, %v25_v2 }
   0x4   :  { %167 = vmatpush3.bf16.msra.mxu0 %v166_v4 }
   0x5   :  { %8 = vsyncpa [#allocation4], 0  ;;  %168 = vmatprep.subr.bf16.mxu0 %v205_v3  ;;  %v27_v8 = vld [vmem:[%s275_s1 + $0x20] sm:$0xff]  ;;  %v28_v9 = vld [vmem:[%s275_s1 + $0x28] sm:$0xff]  ;;  %vm31_vm2 = vcmask 523264  }
   0x6   :  { %v172_v10 = vpack.c.bf16 %v28_v9, %v27_v8  ;;  %v29_v11 = vld [vmem:[%s275_s1 + $0x30] sm:$0xff]  ;;  %v30_v12 = vld [vmem:[%s275_s1 + $0x38] sm:$0xff]  ;;  %v22_v14 = vld [vmem:[%s274_s0] sm:$0xff]  ;;  %s208_s1 = smov [#allocation3]  }
   0x7   :  { %v175_v13 = vpack.c.bf16 %v30_v12, %v29_v11  ;;  %v136_v19 = vld [vmem:[%s276_s2] ss:$0 sm:$0xff]  ;;  %s127_s5 = sshll.u32 %s208_s1, 4  ;;  %s128_s5 = int_to_ptr.vmem [resolvable:$true] %s127_s5 }
   0x8   :  { %170 = vmatpush3.bf16.msra.mxu0 %v169_v7  ;;  %v21_v15 = vld [vmem:[#allocation2] sm:$0xff]  ;;  %s181_s0 = scalar_lea.vmem %s128_s5, 128  ;;  %p186_p1 = scmp.lt.s32.totalorder %s128_s5, %s128_s5 }
   0x9   :  { %171 = vmatprep.subr.bf16.mxu0 %v205_v3  ;;  %p182_p0 = scmp.ne.s32.totalorder %s128_s5, %s181_s0  ;;  %p187_p2 = scmp.lt.s32.totalorder %s181_s0, %s181_s0 }
   0xb   :  { %p188_p3 = por %p187_p2, %p186_p1 }
   0xc   :  { %173 = vmatpush3.bf16.msra.mxu0 %v172_v10 }
   0xd   :  { %174 = vmatprep.subr.bf16.mxu0 %v205_v3  ;;  %p189_p4 = pnand %p188_p3, %p182_p0 }
  0x10   :  { %176 = vmatpush3.bf16.msra.mxu0 %v175_v13 }
  0x13   :  { %163 = vmatmul.mubr.msk.f32.vlgmr.msra.gmra.mrb[0].mxu0 %vm31_vm2, %v22_v14 }
  0xe6   :  { %v101_v16 = vpop.f32.mrb[0].mxu0 }
  0xe7   :  { %v105_v17 = vadd.f32 %v101_v16, %v21_v15  ;;  %v164_v18 = vpop.f32.mrb[1].mxu0 }
  0xe9   :  { %107 = vst.msk [vmem:[#allocation2] sm:$0xff] %vm19_vm0, %v105_v17 }
  0xf0   :  { %v111_v20 = vld [vmem:[#allocation2] sm:$0xff] }
  0xf1   :  { %v119_v21 = vadd.f32 %v136_v19, %v111_v20 }
  0xf3   :  { %120 = vst.msk [vmem:[#allocation3] sm:$0xff] %vm19_vm0, %v119_v21 }
  0xf4   :  { %192 = shalt.err (!%p189_p4)
}
  0xf5   :  { %s193_s8 = scalar_lea.hbm %s277_s3, 128 }
  0xf6   :  { %p194_p5 = scmp.ne.s32.totalorder %s277_s3, %s193_s8  ;;  %p197_p6 = scmp.lt.u32.totalorder %s193_s8, %s277_s3 }
  0xf8   :  { %p199_p7 = pnand %p197_p6, %p194_p5 }
  0xfa   :  { %202 = shalt.err (!%p199_p7)
}
  0xfb   :  { %130 = dma.vmem_to_hbm [thread:$0]  %s128_s5, 128, %s277_s3, [#allocation4]  }
  0xfc   :  { %203 = dma.done.wait [#allocation4], 128  }
  0xfd   :  { %204 = vsyncadd [#allocation4], 4294967168 }
  0xfe   :  { %134 = vsyncpa [#allocation4], 1 }

</bundles_post_ra>
